<compile_context>
chip_gen: v7x
topology: tpu7x:2x2x1
jax: 0.10.0
libtpu: 0.0.40
codegen_flags: <defaults>
</compile_context>

<pallas_src>
import functools
import math

import jax
import jax.numpy as jnp
from jax.experimental import pallas as pl
from jax.experimental.pallas import tpu as pltpu


def _pick_tile(dim, target, align):
    """Largest tile <= target dividing dim.

    Result is either the full dim (always a legal block) or a multiple of
    `align` (8 for sublane axes, 128 for lane axes), so the (8, 128) block
    constraint is always satisfied."""
    if dim <= target:
        return dim
    t = (target // align) * align
    while t >= align:
        if dim % t == 0:
            return t
        t -= align
    return dim  # fallback: full extent


# ----------------------------------------------------------------------------
# Kernel 1: tiled linear projection  y = x @ W + b   (W already (K, N))
# ----------------------------------------------------------------------------
def _linear_kernel(x_ref, w_ref, b_ref, o_ref, acc_ref, *, compute_dtype):
    kk = pl.program_id(2)

    @pl.when(kk == 0)
    def _init():
        # Fold the bias into the accumulator init (done once per output tile,
        # not re-broadcast every reduction step).
        acc_ref[...] = jnp.broadcast_to(
            b_ref[...].astype(jnp.float32), acc_ref.shape)

    x = x_ref[...].astype(compute_dtype)
    w = w_ref[...].astype(compute_dtype)
    acc_ref[...] += jnp.dot(x, w, preferred_element_type=jnp.float32)

    @pl.when(kk == pl.num_programs(2) - 1)
    def _store():
        o_ref[...] = acc_ref[...].astype(o_ref.dtype)


def linear(x, w_t, b, *, out_dtype=jnp.float32, compute_dtype=jnp.float32,
           tm=256, tn=256, tk=512):
    """y = x @ w_t + b.  x: (M, K), w_t: (K, N) pre-transposed, b: (N,)."""
    M, K = x.shape
    Kw, N = w_t.shape
    assert Kw == K
    tm = _pick_tile(M, tm, 8)
    tn = _pick_tile(N, tn, 128)
    tk = _pick_tile(K, tk, 128)
    grid = (M // tm, N // tn, K // tk)
    return pl.pallas_call(
        functools.partial(_linear_kernel, compute_dtype=compute_dtype),
        out_shape=jax.ShapeDtypeStruct((M, N), out_dtype),
        grid_spec=pltpu.PrefetchScalarGridSpec(
            num_scalar_prefetch=0,
            grid=grid,
            in_specs=[
                pl.BlockSpec((tm, tk), lambda i, j, k: (i, k)),   # x
                pl.BlockSpec((tk, tn), lambda i, j, k: (k, j)),   # w (K,N)
                pl.BlockSpec((1, tn), lambda i, j, k: (0, j)),    # bias
            ],
            out_specs=pl.BlockSpec((tm, tn), lambda i, j, k: (i, j)),
            scratch_shapes=[pltpu.VMEM((tm, tn), jnp.float32)],
        ),
        compiler_params=pltpu.CompilerParams(
            dimension_semantics=("parallel", "parallel", "arbitrary")),
    )(x, w_t, b.reshape(1, N))


# ----------------------------------------------------------------------------
# Kernel 2: attention over a block of heads of one batch element.
#   Inputs are (T, Hb, D) slices taken straight from the fused qkv projection
#   output (T, B, 3, H, D); outputs: context in (T, B, H, D) layout and the
#   head-averaged attention weights (B, T, S) accumulated across the head axis.
# ----------------------------------------------------------------------------
def _attn_kernel(q_ref, k_ref, v_ref, o_ref, w_ref, *, compute_dtype,
                 inv_num_heads):
    @pl.when(pl.program_id(1) == 0)
    def _init():
        w_ref[...] = jnp.zeros_like(w_ref)

    # Head-major for the batched MXU matmuls (lane dim D preserved).
    q = jnp.transpose(q_ref[...].astype(compute_dtype), (1, 0, 2))  # (Hb,T,D)
    k = jnp.transpose(k_ref[...].astype(compute_dtype), (1, 0, 2))  # (Hb,S,D)
    v = jnp.transpose(v_ref[...].astype(compute_dtype), (1, 0, 2))  # (Hb,S,D)

    s = jnp.einsum("htd,hsd->hts", q, k,
                   preferred_element_type=jnp.float32)              # (Hb,T,S)
    m = jnp.max(s, axis=-1, keepdims=True)
    e = jnp.exp(s - m)
    l = jnp.sum(e, axis=-1, keepdims=True)
    p = e * pl.reciprocal(l, approx=True)     # softmax (f32 stats, EUP recip)

    ctx = jnp.einsum("hts,hsd->htd", p.astype(compute_dtype), v,
                     preferred_element_type=jnp.float32)            # (Hb,T,D)
    o_ref[...] = jnp.transpose(ctx, (1, 0, 2)).astype(o_ref.dtype)  # (T,Hb,D)

    # Head-averaged attention probabilities, accumulated on-chip.
    w_ref[...] += jnp.sum(p, axis=0, keepdims=True) * inv_num_heads


def attention(qkv, *, num_heads, compute_dtype=jnp.float32,
              heads_per_block=8):
    """qkv: (T, B, 3, H, D) fused projection output (q slice pre-scaled).

    Returns (ctx, attn_weights) with ctx (T, B, H, D) and weights (B, T, T)."""
    T, B, three, H, D = qkv.shape
    assert three == 3 and H == num_heads
    S = T
    Hb = _pick_tile(H, heads_per_block, 8)
    grid = (B, H // Hb)
    qkv_block = (T, None, None, Hb, D)   # squeeze batch and q/k/v-select dims

    ctx, attn_w = pl.pallas_call(
        functools.partial(_attn_kernel, compute_dtype=compute_dtype,
                          inv_num_heads=1.0 / num_heads),
        out_shape=(
            jax.ShapeDtypeStruct((T, B, H, D), compute_dtype),
            jax.ShapeDtypeStruct((B, T, S), jnp.float32),
        ),
        grid_spec=pltpu.PrefetchScalarGridSpec(
            num_scalar_prefetch=0,
            grid=grid,
            in_specs=[
                pl.BlockSpec(qkv_block, lambda b, h: (0, b, 0, h, 0)),  # q
                pl.BlockSpec(qkv_block, lambda b, h: (0, b, 1, h, 0)),  # k
                pl.BlockSpec(qkv_block, lambda b, h: (0, b, 2, h, 0)),  # v
            ],
            out_specs=(
                pl.BlockSpec((T, None, Hb, D), lambda b, h: (0, b, h, 0)),
                pl.BlockSpec((1, T, S), lambda b, h: (b, 0, 0)),
            ),
        ),
        compiler_params=pltpu.CompilerParams(
            dimension_semantics=("parallel", "arbitrary")),
    )(qkv, qkv, qkv)
    return ctx, attn_w


# ----------------------------------------------------------------------------
# Parameter packing (done once) + module forward (glue is metadata-only)
# ----------------------------------------------------------------------------
def prepare_params(params, num_heads, compute_dtype=jnp.float32):
    """Pack q/k/v weights into one pre-transposed (E, 3E) matrix; fold the
    1/sqrt(head_dim) scaling into the q weight/bias slice; pre-transpose the
    output projection. Weights are stored in the MXU compute dtype."""
    qkv_dim = params["wq"].shape[0]
    scaling = (qkv_dim // num_heads) ** (-0.5)
    w_qkv = jnp.concatenate(
        [params["wq"].T * scaling, params["wk"].T, params["wv"].T], axis=1)
    b_qkv = jnp.concatenate(
        [params["bq"] * scaling, params["bk"], params["bv"]], axis=0)
    return {
        "w_qkv": w_qkv.astype(compute_dtype),
        "b_qkv": b_qkv.astype(jnp.float32),
        "wo_t": params["wo"].T.astype(compute_dtype),
        "bo": params["bo"].astype(jnp.float32),
    }


def multihead_attention_super_forward(query, prepared, *, num_heads,
                                      compute_dtype=jnp.float32):
    """query: (tgt_len, bsz, embed_dim) f32. Self-attention forward."""
    T, B, E = query.shape
    D = E // num_heads

    x2d = query.reshape(T * B, E)

    # Fused q/k/v projection: activations read from HBM once, q pre-scaled.
    qkv = linear(x2d, prepared["w_qkv"], prepared["b_qkv"],
                 out_dtype=compute_dtype, compute_dtype=compute_dtype)
    qkv = qkv.reshape(T, B, 3, num_heads, D)   # metadata-only reshape

    ctx, attn_weights = attention(qkv, num_heads=num_heads,
                                  compute_dtype=compute_dtype)

    out_dim = prepared["wo_t"].shape[1]
    attn = linear(ctx.reshape(T * B, E), prepared["wo_t"], prepared["bo"],
                  out_dtype=jnp.float32, compute_dtype=compute_dtype)
    return attn.reshape(T, B, out_dim), attn_weights


# ----------------------------------------------------------------------------
# Deterministic parameter init (mirrors reset_parameters shapes)
# ----------------------------------------------------------------------------
def xavier_uniform(key, shape, gain=1.0):
    fan_out, fan_in = shape
    a = gain * math.sqrt(6.0 / (fan_in + fan_out))
    return jax.random.uniform(key, shape, jnp.float32, -a, a)


def init_params(key, embed_dim):
    ks = jax.random.split(key, 7)
    g = 1.0 / math.sqrt(2.0)
    return {
        "wq": xavier_uniform(ks[0], (embed_dim, embed_dim), gain=g),
        "wk": xavier_uniform(ks[1], (embed_dim, embed_dim), gain=g),
        "wv": xavier_uniform(ks[2], (embed_dim, embed_dim), gain=g),
        "wo": xavier_uniform(ks[3], (embed_dim, embed_dim), gain=1.0),
        "bq": jax.random.normal(ks[4], (embed_dim,), jnp.float32) * 0.02,
        "bk": jax.random.normal(ks[5], (embed_dim,), jnp.float32) * 0.02,
        "bv": jax.random.normal(ks[6], (embed_dim,), jnp.float32) * 0.02,
        "bo": jnp.zeros((embed_dim,), jnp.float32),
    }


# ----------------------------------------------------------------------------
# Pure-JAX reference (for correctness check of the Pallas path)
# ----------------------------------------------------------------------------
def reference_forward(query, params, num_heads):
    T, B, E = query.shape
    hd = E // num_heads
    scaling = hd ** (-0.5)
    x = query.reshape(T * B, E)
    q = (x @ params["wq"].T + params["bq"]) * scaling
    k = x @ params["wk"].T + params["bk"]
    v = x @ params["wv"].T + params["bv"]
    th = lambda t: jnp.transpose(t.reshape(T, B * num_heads, hd), (1, 0, 2))
    qh, kh, vh = th(q), th(k), th(v)
    s = jnp.einsum("btd,bsd->bts", qh, kh)
    p = jax.nn.softmax(s, axis=-1)
    ctx = jnp.einsum("bts,bsd->btd", p, vh)
    attn = jnp.transpose(ctx, (1, 0, 2)).reshape(T * B, E)
    attn = (attn @ params["wo"].T + params["bo"]).reshape(T, B, E)
    w = p.reshape(B, num_heads, T, T).sum(axis=1) / num_heads
    return attn, w


if __name__ == "__main__":
    tgt_len, bsz, embed_dim, num_heads = 8, 2, 32, 4

    key = jax.random.PRNGKey(0)
    kp, kx = jax.random.split(key)
    params = init_params(kp, embed_dim)
    query = jax.random.normal(kx, (tgt_len, bsz, embed_dim), jnp.float32)

    ref_attn, ref_w = reference_forward(query, params, num_heads)

    fwd = jax.jit(multihead_attention_super_forward,
                  static_argnames=("num_heads", "compute_dtype"))

    # f32 MXU path (tight tolerance; approx-reciprocal softmax denominator).
    prep32 = prepare_params(params, num_heads, compute_dtype=jnp.float32)
    attn32, w32 = fwd(query, prep32, num_heads=num_heads,
                      compute_dtype=jnp.float32)
    attn32 = jax.block_until_ready(attn32)
    w32 = jax.block_until_ready(w32)
    assert attn32.shape == (tgt_len, bsz, embed_dim)
    assert w32.shape == (bsz, tgt_len, tgt_len)
    assert jnp.allclose(attn32, ref_attn, atol=5e-3, rtol=5e-3)
    assert jnp.allclose(w32, ref_w, atol=5e-3, rtol=5e-3)

    # bf16 MXU path (f32 accumulation & softmax stats), looser tolerance.
    prep16 = prepare_params(params, num_heads, compute_dtype=jnp.bfloat16)
    attn16, w16 = fwd(query, prep16, num_heads=num_heads,
                      compute_dtype=jnp.bfloat16)
    attn16 = jax.block_until_ready(attn16)
    w16 = jax.block_until_ready(w16)
    assert attn16.shape == (tgt_len, bsz, embed_dim)
    assert jnp.allclose(attn16, ref_attn, atol=5e-2, rtol=5e-2)
    assert jnp.allclose(w16, ref_w, atol=5e-2, rtol=5e-2)

    print("KERNEL_OK")
</pallas_src>

<mosaic_0001>
module attributes {stable_mosaic.version = 11 : i64} {
  func.func @_linear_kernel(%arg0: i32, %arg1: i32, %arg2: i32, %arg3: memref<16x32xf32, #tpu.memory_space<vmem>>, %arg4: memref<32x96xf32, #tpu.memory_space<vmem>>, %arg5: memref<1x96xf32, #tpu.memory_space<vmem>>, %arg6: memref<16x96xf32, #tpu.memory_space<vmem>>, %arg7: memref<16x96xf32, #tpu.memory_space<vmem>>) attributes {dimension_semantics = [#tpu.dimension_semantics<parallel>, #tpu.dimension_semantics<parallel>, #tpu.dimension_semantics<arbitrary>], iteration_bounds = array<i64: 1, 1, 1>, scalar_prefetch = 0 : i64, scratch_operands = 1 : i64, tpu.core_type = #tpu.core_type<tc>, window_params = [{transform_indices = @transform_0, window_bounds = array<i64: 16, 32>}, {transform_indices = @transform_1, window_bounds = array<i64: 32, 96>}, {transform_indices = @transform_2, window_bounds = array<i64: 1, 96>}, {transform_indices = @transform_3, window_bounds = array<i64: 16, 96>}]} {
    %c0_i32 = arith.constant 0 : i32
    %0 = arith.cmpi eq, %arg2, %c0_i32 : i32
    %1 = arith.extui %0 : i1 to i32
    %c0_i32_0 = arith.constant 0 : i32
    %2 = arith.cmpi ne, %1, %c0_i32_0 : i32
    scf.if %2 {
      %c0_10 = arith.constant 0 : index
      %c0_11 = arith.constant 0 : index
      %12 = vector.load %arg5[%c0_10, %c0_11] : memref<1x96xf32, #tpu.memory_space<vmem>>, vector<1x96xf32>
      %13 = vector.shape_cast %12 : vector<1x96xf32> to vector<1x96xf32>
      %14 = vector.broadcast %13 : vector<1x96xf32> to vector<16x96xf32>
      %c0_12 = arith.constant 0 : index
      %c0_13 = arith.constant 0 : index
      %15 = vector.load %arg7[%c0_12, %c0_13] : memref<16x96xf32, #tpu.memory_space<vmem>>, vector<16x96xf32>
      tpu.vector_store %arg7[%c0_12, %c0_13], %14 {strides = array<i32>} : memref<16x96xf32, #tpu.memory_space<vmem>>, vector<16x96xf32>,
    } else {
    }
    %c0 = arith.constant 0 : index
    %c0_1 = arith.constant 0 : index
    %3 = vector.load %arg3[%c0, %c0_1] : memref<16x32xf32, #tpu.memory_space<vmem>>, vector<16x32xf32>
    %c0_2 = arith.constant 0 : index
    %c0_3 = arith.constant 0 : index
    %4 = vector.load %arg4[%c0_2, %c0_3] : memref<32x96xf32, #tpu.memory_space<vmem>>, vector<32x96xf32>
    %c0_4 = arith.constant 0 : index
    %c0_5 = arith.constant 0 : index
    %5 = vector.load %arg7[%c0_4, %c0_5] : memref<16x96xf32, #tpu.memory_space<vmem>>, vector<16x96xf32>
    %cst = arith.constant dense<0.000000e+00> : vector<16x96xf32>
    %6 = tpu.matmul %3, %4, %cst {dimension_numbers = #tpu.dot_dimension_numbers<[1], [0], [0], [1], [0, 0, 1, 1], [], []>} : vector<16x32xf32>, vector<32x96xf32>, vector<16x96xf32> -> vector<16x96xf32>
    %7 = arith.addf %5, %6 : vector<16x96xf32>
    %c0_6 = arith.constant 0 : index
    %c0_7 = arith.constant 0 : index
    %8 = vector.load %arg7[%c0_6, %c0_7] : memref<16x96xf32, #tpu.memory_space<vmem>>, vector<16x96xf32>
    tpu.vector_store %arg7[%c0_6, %c0_7], %7 {strides = array<i32>} : memref<16x96xf32, #tpu.memory_space<vmem>>, vector<16x96xf32>,
    %c0_i32_8 = arith.constant 0 : i32
    %9 = arith.cmpi eq, %arg2, %c0_i32_8 : i32
    %10 = arith.extui %9 : i1 to i32
    %c0_i32_9 = arith.constant 0 : i32
    %11 = arith.cmpi ne, %10, %c0_i32_9 : i32
    scf.if %11 {
      %c0_10 = arith.constant 0 : index
      %c0_11 = arith.constant 0 : index
      %12 = vector.load %arg7[%c0_10, %c0_11] : memref<16x96xf32, #tpu.memory_space<vmem>>, vector<16x96xf32>
      %c0_12 = arith.constant 0 : index
      %c0_13 = arith.constant 0 : index
      %13 = vector.load %arg6[%c0_12, %c0_13] : memref<16x96xf32, #tpu.memory_space<vmem>>, vector<16x96xf32>
      tpu.vector_store %arg6[%c0_12, %c0_13], %12 {strides = array<i32>} : memref<16x96xf32, #tpu.memory_space<vmem>>, vector<16x96xf32>,
    } else {
    }
    return
  }
  func.func @transform_0(%arg0: i32, %arg1: i32, %arg2: i32) -> (i32, i32) {
    %c0_i32 = arith.constant 0 : i32
    return %arg0, %arg2 : i32, i32
  }
  func.func @transform_1(%arg0: i32, %arg1: i32, %arg2: i32) -> (i32, i32) {
    %c0_i32 = arith.constant 0 : i32
    return %arg2, %arg1 : i32, i32
  }
  func.func @transform_2(%arg0: i32, %arg1: i32, %arg2: i32) -> (i32, i32) {
    %c0_i32 = arith.constant 0 : i32
    %c0_i32_0 = arith.constant 0 : i32
    return %c0_i32, %arg1 : i32, i32
  }
  func.func @transform_3(%arg0: i32, %arg1: i32, %arg2: i32) -> (i32, i32) {
    %c0_i32 = arith.constant 0 : i32
    return %arg0, %arg1 : i32, i32
  }
}

module attributes {stable_mosaic.version = 11 : i64} {
  func.func @_attn_kernel(%arg0: i32, %arg1: i32, %arg2: memref<8x1x1x4x8xf32, #tpu.memory_space<vmem>>, %arg3: memref<8x1x1x4x8xf32, #tpu.memory_space<vmem>>, %arg4: memref<8x1x1x4x8xf32, #tpu.memory_space<vmem>>, %arg5: memref<8x1x4x8xf32, #tpu.memory_space<vmem>>, %arg6: memref<1x8x8xf32, #tpu.memory_space<vmem>>) attributes {dimension_semantics = [#tpu.dimension_semantics<parallel>, #tpu.dimension_semantics<arbitrary>], iteration_bounds = array<i64: 2, 1>, scalar_prefetch = 0 : i64, scratch_operands = 0 : i64, tpu.core_type = #tpu.core_type<tc>, window_params = [{transform_indices = @transform_0, window_bounds = array<i64: 8, 1, 1, 4, 8>}, {transform_indices = @transform_1, window_bounds = array<i64: 8, 1, 1, 4, 8>}, {transform_indices = @transform_2, window_bounds = array<i64: 8, 1, 1, 4, 8>}, {transform_indices = @transform_3, window_bounds = array<i64: 8, 1, 4, 8>}, {transform_indices = @transform_4, window_bounds = array<i64: 1, 8, 8>}]} {
    %c0_i32 = arith.constant 0 : i32
    %0 = arith.cmpi eq, %arg1, %c0_i32 : i32
    %1 = arith.extui %0 : i1 to i32
    %c0_i32_0 = arith.constant 0 : i32
    %2 = arith.cmpi ne, %1, %c0_i32_0 : i32
    scf.if %2 {
      %cst_30 = arith.constant 0.000000e+00 : f32
      %35 = vector.broadcast %cst_30 : f32 to vector<1x8x8xf32>
      %c0_31 = arith.constant 0 : index
      %c0_32 = arith.constant 0 : index
      %c0_33 = arith.constant 0 : index
      %36 = vector.load %arg6[%c0_31, %c0_32, %c0_33] : memref<1x8x8xf32, #tpu.memory_space<vmem>>, vector<1x8x8xf32>
      tpu.vector_store %arg6[%c0_31, %c0_32, %c0_33], %35 {strides = array<i32>} : memref<1x8x8xf32, #tpu.memory_space<vmem>>, vector<1x8x8xf32>,
    } else {
    }
    %c0 = arith.constant 0 : index
    %c0_1 = arith.constant 0 : index
    %c0_2 = arith.constant 0 : index
    %c0_3 = arith.constant 0 : index
    %c0_4 = arith.constant 0 : index
    %3 = vector.load %arg2[%c0, %c0_1, %c0_2, %c0_3, %c0_4] : memref<8x1x1x4x8xf32, #tpu.memory_space<vmem>>, vector<8x1x1x4x8xf32>
    %4 = vector.shape_cast %3 : vector<8x1x1x4x8xf32> to vector<8x4x8xf32>
    %5 = tpu.transpose %4, [1, 0, 2] : vector<8x4x8xf32> -> vector<4x8x8xf32>
    %c0_5 = arith.constant 0 : index
    %c0_6 = arith.constant 0 : index
    %c0_7 = arith.constant 0 : index
    %c0_8 = arith.constant 0 : index
    %c0_9 = arith.constant 0 : index
    %6 = vector.load %arg3[%c0_5, %c0_6, %c0_7, %c0_8, %c0_9] : memref<8x1x1x4x8xf32, #tpu.memory_space<vmem>>, vector<8x1x1x4x8xf32>
    %7 = vector.shape_cast %6 : vector<8x1x1x4x8xf32> to vector<8x4x8xf32>
    %8 = tpu.transpose %7, [1, 0, 2] : vector<8x4x8xf32> -> vector<4x8x8xf32>
    %c0_10 = arith.constant 0 : index
    %c0_11 = arith.constant 0 : index
    %c0_12 = arith.constant 0 : index
    %c0_13 = arith.constant 0 : index
    %c0_14 = arith.constant 0 : index
    %9 = vector.load %arg4[%c0_10, %c0_11, %c0_12, %c0_13, %c0_14] : memref<8x1x1x4x8xf32, #tpu.memory_space<vmem>>, vector<8x1x1x4x8xf32>
    %10 = vector.shape_cast %9 : vector<8x1x1x4x8xf32> to vector<8x4x8xf32>
    %11 = tpu.transpose %10, [1, 0, 2] : vector<8x4x8xf32> -> vector<4x8x8xf32>
    "tpu.trace_start"() <{level = 10 : i32, message = "htd,hsd->hts"}> : () -> ()
    %cst = arith.constant dense<0.000000e+00> : vector<4x8x8xf32>
    %12 = tpu.matmul %5, %8, %cst {dimension_numbers = #tpu.dot_dimension_numbers<[2], [2], [1], [1], [0, 0, 0, 1, 1, 1], [0], [0]>} : vector<4x8x8xf32>, vector<4x8x8xf32>, vector<4x8x8xf32> -> vector<4x8x8xf32>
    "tpu.trace_stop"() : () -> ()
    %cst_15 = arith.constant dense<0xFF800000> : vector<4x8xf32>
    %13 = vector.multi_reduction <maximumf>, %12, %cst_15 [2] : vector<4x8x8xf32> to vector<4x8xf32>
    %14 = vector.shape_cast %13 : vector<4x8xf32> to vector<4x8x1xf32>
    %15 = vector.broadcast %14 : vector<4x8x1xf32> to vector<4x8x8xf32>
    %16 = arith.subf %12, %15 : vector<4x8x8xf32>
    %17 = math.exp %16 : vector<4x8x8xf32>
    %cst_16 = arith.constant dense<0.000000e+00> : vector<4x8xf32>
    %18 = vector.multi_reduction <add>, %17, %cst_16 [2] : vector<4x8x8xf32> to vector<4x8xf32>
    %19 = vector.shape_cast %18 : vector<4x8xf32> to vector<4x8x1xf32>
    %20 = tpu.reciprocal %19 {approx = true} : vector<4x8x1xf32> -> vector<4x8x1xf32>
    %21 = vector.broadcast %20 : vector<4x8x1xf32> to vector<4x8x8xf32>
    %22 = arith.mulf %17, %21 : vector<4x8x8xf32>
    "tpu.trace_start"() <{level = 10 : i32, message = "hts,hsd->htd"}> : () -> ()
    %cst_17 = arith.constant dense<0.000000e+00> : vector<4x8x8xf32>
    %23 = tpu.matmul %22, %11, %cst_17 {dimension_numbers = #tpu.dot_dimension_numbers<[2], [1], [1], [2], [0, 0, 0, 1, 1, 2], [0], [0]>} : vector<4x8x8xf32>, vector<4x8x8xf32>, vector<4x8x8xf32> -> vector<4x8x8xf32>
    "tpu.trace_stop"() : () -> ()
    %24 = tpu.transpose %23, [1, 0, 2] : vector<4x8x8xf32> -> vector<8x4x8xf32>
    %c0_18 = arith.constant 0 : index
    %c0_19 = arith.constant 0 : index
    %c0_20 = arith.constant 0 : index
    %c0_21 = arith.constant 0 : index
    %25 = vector.load %arg5[%c0_18, %c0_19, %c0_20, %c0_21] : memref<8x1x4x8xf32, #tpu.memory_space<vmem>>, vector<8x1x4x8xf32>
    %26 = vector.shape_cast %25 : vector<8x1x4x8xf32> to vector<8x4x8xf32>
    %27 = vector.shape_cast %24 : vector<8x4x8xf32> to vector<8x1x4x8xf32>
    tpu.vector_store %arg5[%c0_18, %c0_19, %c0_20, %c0_21], %27 {strides = array<i32>} : memref<8x1x4x8xf32, #tpu.memory_space<vmem>>, vector<8x1x4x8xf32>,
    %c0_22 = arith.constant 0 : index
    %c0_23 = arith.constant 0 : index
    %c0_24 = arith.constant 0 : index
    %28 = vector.load %arg6[%c0_22, %c0_23, %c0_24] : memref<1x8x8xf32, #tpu.memory_space<vmem>>, vector<1x8x8xf32>
    %cst_25 = arith.constant dense<0.000000e+00> : vector<8x8xf32>
    %29 = vector.multi_reduction <add>, %22, %cst_25 [0] : vector<4x8x8xf32> to vector<8x8xf32>
    %30 = vector.shape_cast %29 : vector<8x8xf32> to vector<1x8x8xf32>
    %cst_26 = arith.constant 2.500000e-01 : f32
    %31 = vector.broadcast %cst_26 : f32 to vector<1x8x8xf32>
    %32 = arith.mulf %30, %31 : vector<1x8x8xf32>
    %33 = arith.addf %28, %32 : vector<1x8x8xf32>
    %c0_27 = arith.constant 0 : index
    %c0_28 = arith.constant 0 : index
    %c0_29 = arith.constant 0 : index
    %34 = vector.load %arg6[%c0_27, %c0_28, %c0_29] : memref<1x8x8xf32, #tpu.memory_space<vmem>>, vector<1x8x8xf32>
    tpu.vector_store %arg6[%c0_27, %c0_28, %c0_29], %33 {strides = array<i32>} : memref<1x8x8xf32, #tpu.memory_space<vmem>>, vector<1x8x8xf32>,
    return
  }
  func.func @transform_0(%arg0: i32, %arg1: i32) -> (i32, i32, i32, i32, i32) {
    %c0_i32 = arith.constant 0 : i32
    %c0_i32_0 = arith.constant 0 : i32
    %c0_i32_1 = arith.constant 0 : i32
    %c0_i32_2 = arith.constant 0 : i32
    return %c0_i32, %arg0, %c0_i32_0, %arg1, %c0_i32_1 : i32, i32, i32, i32, i32
  }
  func.func @transform_1(%arg0: i32, %arg1: i32) -> (i32, i32, i32, i32, i32) {
    %c0_i32 = arith.constant 0 : i32
    %c1_i32 = arith.constant 1 : i32
    %c0_i32_0 = arith.constant 0 : i32
    %c0_i32_1 = arith.constant 0 : i32
    return %c0_i32, %arg0, %c1_i32, %arg1, %c0_i32_0 : i32, i32, i32, i32, i32
  }
  func.func @transform_2(%arg0: i32, %arg1: i32) -> (i32, i32, i32, i32, i32) {
    %c0_i32 = arith.constant 0 : i32
    %c2_i32 = arith.constant 2 : i32
    %c0_i32_0 = arith.constant 0 : i32
    %c0_i32_1 = arith.constant 0 : i32
    return %c0_i32, %arg0, %c2_i32, %arg1, %c0_i32_0 : i32, i32, i32, i32, i32
  }
  func.func @transform_3(%arg0: i32, %arg1: i32) -> (i32, i32, i32, i32) {
    %c0_i32 = arith.constant 0 : i32
    %c0_i32_0 = arith.constant 0 : i32
    %c0_i32_1 = arith.constant 0 : i32
    return %c0_i32, %arg0, %arg1, %c0_i32_0 : i32, i32, i32, i32
  }
  func.func @transform_4(%arg0: i32, %arg1: i32) -> (i32, i32, i32) {
    %c0_i32 = arith.constant 0 : i32
    %c0_i32_0 = arith.constant 0 : i32
    %c0_i32_1 = arith.constant 0 : i32
    return %arg0, %c0_i32, %c0_i32_0 : i32, i32, i32
  }
}

module attributes {stable_mosaic.version = 11 : i64} {
  func.func @_linear_kernel(%arg0: i32, %arg1: i32, %arg2: i32, %arg3: memref<16x32xf32, #tpu.memory_space<vmem>>, %arg4: memref<32x32xf32, #tpu.memory_space<vmem>>, %arg5: memref<1x32xf32, #tpu.memory_space<vmem>>, %arg6: memref<16x32xf32, #tpu.memory_space<vmem>>, %arg7: memref<16x32xf32, #tpu.memory_space<vmem>>) attributes {dimension_semantics = [#tpu.dimension_semantics<parallel>, #tpu.dimension_semantics<parallel>, #tpu.dimension_semantics<arbitrary>], iteration_bounds = array<i64: 1, 1, 1>, scalar_prefetch = 0 : i64, scratch_operands = 1 : i64, tpu.core_type = #tpu.core_type<tc>, window_params = [{transform_indices = @transform_0, window_bounds = array<i64: 16, 32>}, {transform_indices = @transform_1, window_bounds = array<i64: 32, 32>}, {transform_indices = @transform_2, window_bounds = array<i64: 1, 32>}, {transform_indices = @transform_3, window_bounds = array<i64: 16, 32>}]} {
    %c0_i32 = arith.constant 0 : i32
    %0 = arith.cmpi eq, %arg2, %c0_i32 : i32
    %1 = arith.extui %0 : i1 to i32
    %c0_i32_0 = arith.constant 0 : i32
    %2 = arith.cmpi ne, %1, %c0_i32_0 : i32
    scf.if %2 {
      %c0_10 = arith.constant 0 : index
      %c0_11 = arith.constant 0 : index
      %12 = vector.load %arg5[%c0_10, %c0_11] : memref<1x32xf32, #tpu.memory_space<vmem>>, vector<1x32xf32>
      %13 = vector.shape_cast %12 : vector<1x32xf32> to vector<1x32xf32>
      %14 = vector.broadcast %13 : vector<1x32xf32> to vector<16x32xf32>
      %c0_12 = arith.constant 0 : index
      %c0_13 = arith.constant 0 : index
      %15 = vector.load %arg7[%c0_12, %c0_13] : memref<16x32xf32, #tpu.memory_space<vmem>>, vector<16x32xf32>
      tpu.vector_store %arg7[%c0_12, %c0_13], %14 {strides = array<i32>} : memref<16x32xf32, #tpu.memory_space<vmem>>, vector<16x32xf32>,
    } else {
    }
    %c0 = arith.constant 0 : index
    %c0_1 = arith.constant 0 : index
    %3 = vector.load %arg3[%c0, %c0_1] : memref<16x32xf32, #tpu.memory_space<vmem>>, vector<16x32xf32>
    %c0_2 = arith.constant 0 : index
    %c0_3 = arith.constant 0 : index
    %4 = vector.load %arg4[%c0_2, %c0_3] : memref<32x32xf32, #tpu.memory_space<vmem>>, vector<32x32xf32>
    %c0_4 = arith.constant 0 : index
    %c0_5 = arith.constant 0 : index
    %5 = vector.load %arg7[%c0_4, %c0_5] : memref<16x32xf32, #tpu.memory_space<vmem>>, vector<16x32xf32>
    %cst = arith.constant dense<0.000000e+00> : vector<16x32xf32>
    %6 = tpu.matmul %3, %4, %cst {dimension_numbers = #tpu.dot_dimension_numbers<[1], [0], [0], [1], [0, 0, 1, 1], [], []>} : vector<16x32xf32>, vector<32x32xf32>, vector<16x32xf32> -> vector<16x32xf32>
    %7 = arith.addf %5, %6 : vector<16x32xf32>
    %c0_6 = arith.constant 0 : index
    %c0_7 = arith.constant 0 : index
    %8 = vector.load %arg7[%c0_6, %c0_7] : memref<16x32xf32, #tpu.memory_space<vmem>>, vector<16x32xf32>
    tpu.vector_store %arg7[%c0_6, %c0_7], %7 {strides = array<i32>} : memref<16x32xf32, #tpu.memory_space<vmem>>, vector<16x32xf32>,
    %c0_i32_8 = arith.constant 0 : i32
    %9 = arith.cmpi eq, %arg2, %c0_i32_8 : i32
    %10 = arith.extui %9 : i1 to i32
    %c0_i32_9 = arith.constant 0 : i32
    %11 = arith.cmpi ne, %10, %c0_i32_9 : i32
    scf.if %11 {
      %c0_10 = arith.constant 0 : index
      %c0_11 = arith.constant 0 : index
      %12 = vector.load %arg7[%c0_10, %c0_11] : memref<16x32xf32, #tpu.memory_space<vmem>>, vector<16x32xf32>
      %c0_12 = arith.constant 0 : index
      %c0_13 = arith.constant 0 : index
      %13 = vector.load %arg6[%c0_12, %c0_13] : memref<16x32xf32, #tpu.memory_space<vmem>>, vector<16x32xf32>
      tpu.vector_store %arg6[%c0_12, %c0_13], %12 {strides = array<i32>} : memref<16x32xf32, #tpu.memory_space<vmem>>, vector<16x32xf32>,
    } else {
    }
    return
  }
  func.func @transform_0(%arg0: i32, %arg1: i32, %arg2: i32) -> (i32, i32) {
    %c0_i32 = arith.constant 0 : i32
    return %arg0, %arg2 : i32, i32
  }
  func.func @transform_1(%arg0: i32, %arg1: i32, %arg2: i32) -> (i32, i32) {
    %c0_i32 = arith.constant 0 : i32
    return %arg2, %arg1 : i32, i32
  }
  func.func @transform_2(%arg0: i32, %arg1: i32, %arg2: i32) -> (i32, i32) {
    %c0_i32 = arith.constant 0 : i32
    %c0_i32_0 = arith.constant 0 : i32
    return %c0_i32, %arg1 : i32, i32
  }
  func.func @transform_3(%arg0: i32, %arg1: i32, %arg2: i32) -> (i32, i32) {
    %c0_i32 = arith.constant 0 : i32
    return %arg0, %arg1 : i32, i32
  }
}

</mosaic_0001>

<bundles_post_ra>
// kernel: multihead_attention_super_forward.3
= control target key start
LH: loop header
LB: loop body
LE: loop exit
PB: predicated region body
PF: predicated region fallthrough
CT: control target
= control target key end

     0   :  { %8 = vsyncpa [#allocation4], 0  ;;  %s309_s0 = inlined_call_operand.hbm [shape: f32[16,32], index: 0, kind: input, shape index: {}]   ;;  %s310_s1 = inlined_call_operand.hbm [shape: f32[32,96], index: 1, kind: input, shape index: {}]   ;;  %s311_s2 = inlined_call_operand.vmem [shape: f32[1,96], index: 2, kind: input, shape index: {}]   ;;  %s312_s3 = inlined_call_operand.vmem [shape: f32[16,96], index: 3, kind: output, shape index: {}]  }
   0x1   :  { %9 = vsyncpa [#allocation6], 0  ;;  %s244_s12 = smov [#allocation3]   ;;  %s196_s16 = scalar_lea.hbm %s309_s0, 256 }
   0x2   :  { %s15_s13 = sshll.u32 %s244_s12, 4  ;;  %p197_p0 = scmp.ne.s32.totalorder %s309_s0, %s196_s16  ;;  %s16_s13 = int_to_ptr.vmem [resolvable:$true] %s15_s13 }
   0x3   :  { %p200_p1 = scmp.lt.u32.totalorder %s196_s16, %s309_s0 }
   0x5   :  { %p202_p2 = pnand %p200_p1, %p197_p0 }
   0x7   :  { %205 = shalt.err (!%p202_p2)
}
   0x8   :  { %s206_s21 = scalar_lea.vmem %s16_s13, 256  ;;  %p211_p4 = scmp.lt.s32.totalorder %s16_s13, %s16_s13 }
   0x9   :  { %p207_p3 = scmp.ne.s32.totalorder %s16_s13, %s206_s21  ;;  %p212_p5 = scmp.lt.s32.totalorder %s206_s21, %s206_s21 }
   0xb   :  { %p213_p6 = por %p212_p5, %p211_p4 }
   0xd   :  { %p214_p7 = pnand %p213_p6, %p207_p3 }
   0xf   :  { %217 = shalt.err (!%p214_p7)
}
  0x10   :  { %s245_s22 = smov 128   ;;  %s246_s23 = smov 8  }
  0x11   :  { %21 = dma.hbm_to_vmem [thread:$0]  %s309_s0, 256, %s16_s13, [#allocation4], %s245_s22, %s245_s22, %s246_s23  }
  0x12   :  { %s247_s26 = smov [#allocation5]   ;;  %s218_s30 = scalar_lea.hbm %s310_s1, 512 }
  0x13   :  { %s27_s27 = sshll.u32 %s247_s26, 4  ;;  %p219_p8 = scmp.ne.s32.totalorder %s310_s1, %s218_s30  ;;  %s28_s27 = int_to_ptr.vmem [resolvable:$true] %s27_s27 }
  0x14   :  { %p222_p9 = scmp.lt.u32.totalorder %s218_s30, %s310_s1 }
  0x16   :  { %p224_p10 = pnand %p222_p9, %p219_p8 }
  0x18   :  { %227 = shalt.err (!%p224_p10)
}
  0x19   :  { %s228_s8 = scalar_lea.vmem %s28_s27, 512  ;;  %p233_p12 = scmp.lt.s32.totalorder %s28_s27, %s28_s27 }
  0x1a   :  { %p229_p11 = scmp.ne.s32.totalorder %s28_s27, %s228_s8  ;;  %p234_p13 = scmp.lt.s32.totalorder %s228_s8, %s228_s8 }
  0x1c   :  { %p235_p0 = por %p234_p13, %p233_p12 }
  0x1e   :  { %p236_p1 = pnand %p235_p0, %p229_p11 }
  0x20   :  { %239 = shalt.err (!%p236_p1)
}
  0x21   :  { %33 = dma.hbm_to_vmem [thread:$0]  %s310_s1, 512, %s28_s27, [#allocation6], %s245_s22, %s245_s22, %s246_s23  }
  0x22   :  { %240 = dma.done.wait [#allocation4], 256  }
  0x23   :  { %241 = vsyncadd [#allocation4], 4294967040 }
  0x24   :  { %242 = dma.done.wait [#allocation6], 512  }
  0x25   :  { %243 = vsyncadd [#allocation6], 4294966784  ;;  %vm64_vm0 = vcmask 261120   ;;  %v58_v0 = vld [vmem:[#allocation5] sm:$0xff]  ;;  %v59_v1 = vld [vmem:[#allocation5 + $0x8] sm:$0xff]  ;;  %vm53_vm1 = vcmask 785408  }
  0x26   :  { %v60_v2 = vld [vmem:[#allocation5 + $0x10] sm:$0xff]  ;;  %v184_v3 = vpack.c.bf16 %v59_v1, %v58_v0  ;;  %v61_v4 = vld [vmem:[#allocation5 + $0x18] sm:$0xff]  ;;  %v164_v7 = vld [vmem:[%s311_s2] ss:$0 sm:$0xff] }
  0x27   :  { %v56_v5 = vld [vmem:[#allocation3] sm:$0xff]  ;;  %v188_v6 = vpack.c.bf16 %v61_v4, %v60_v2  ;;  %55 = vst.msk [vmem:[#allocation2 + $0x8] sm:$0xff] %vm53_vm1, %v164_v7  ;;  %54 = vst.msk [vmem:[#allocation2] sm:$0xff] %vm53_vm1, %v164_v7  ;;  %v57_v8 = vld [vmem:[#allocation3 + $0x8] sm:$0xff] }
  0x28   :  { %181 = vmatprep.mubr.msk.f32.mxu0 %vm64_vm0, %v56_v5  ;;  %185 = vmatprep.subr.bf16.mxu0 %v184_v3 }
  0x29   :  { %187 = vmatpush3.bf16.msra.mxu0 %v184_v3 }
  0x2a   :  { %189 = vmatprep.subr.bf16.mxu0 %v188_v6 }
  0x2d   :  { %191 = vmatpush3.bf16.msra.mxu0 %v188_v6 }
  0x2e   :  { %v63_v9 = vld [vmem:[#allocation2 + $0x8] sm:$0xff]  ;;  %v62_v10 = vld [vmem:[#allocation2] sm:$0xff] }
  0x30   :  { %182 = vmatmul.mubr.msk.f32.vlgmr.msra.gmra.mrb[0].mxu0 %vm64_vm0, %v57_v8 }
 0x103   :  { %v183_v11 = vpop.f32.mrb[0].mxu0 }
 0x104   :  { %v147_v12 = vadd.f32 %v183_v11, %v63_v9  ;;  %v137_v13 = vpop.f32.mrb[1].mxu0 }
 0x105   :  { %v146_v14 = vadd.f32 %v137_v13, %v62_v10 }
 0x106   :  { %150 = vst.msk [vmem:[#allocation2 + $0x8] sm:$0xff] %vm53_vm1, %v147_v12 }
 0x107   :  { %149 = vst.msk [vmem:[#allocation2] sm:$0xff] %vm53_vm1, %v146_v14 }
 0x10d   :  { %v155_v15 = vld [vmem:[#allocation2 + $0x8] sm:$0xff] }
 0x10e   :  { %157 = vst.msk [vmem:[%s312_s3 + $0x8] sm:$0xff] %vm53_vm1, %v155_v15  ;;  %v154_v16 = vld [vmem:[#allocation2] sm:$0xff] }
 0x10f   :  { %156 = vst.msk [vmem:[%s312_s3] sm:$0xff] %vm53_vm1, %v154_v16 }
 0x110   :  { %162 = vsyncpa [#allocation4], 1 }
 0x111   :  { %163 = vsyncpa [#allocation6], 1 }

// kernel: multihead_attention_super_forward.4
= control target key start
LH: loop header
LB: loop body
LE: loop exit
PB: predicated region body
PF: predicated region fallthrough
CT: control target
= control target key end

     0   :  { %10 = vsyncpa [#allocation7], 0  ;;  %s2230_s0 = inlined_call_operand.vmem [shape: f32[8,2,3,4,8], index: 0, kind: input, shape index: {}, may-alias: {0,1,2}]   ;;  %s2231_s1 = inlined_call_operand.vmem [shape: f32[8,2,3,4,8], index: 1, kind: input, shape index: {}, may-alias: {0,1,2}]   ;;  %s2232_s2 = inlined_call_operand.vmem [shape: f32[8,2,3,4,8], index: 2, kind: input, shape index: {}, may-alias: {0,1,2}]   ;;  %s2233_s3 = inlined_call_operand.vmem [shape: f32[8,2,4,8], index: 3, kind: output, shape index: {0}]   ;;  %s2234_s4 = inlined_call_operand.hbm [shape: f32[2,8,8], index: 4, kind: output, shape index: {1}]  }
   0x1   :  { %12 = vsyncpa [#allocation7 + $0x1], 0  ;;  %s1982_s15 = smov 0   ;;  %s1984_s16 = smov 0  }
   0x2   :  { %s1986_s17 = smov 0   ;;  %s1988_s18 = smov 0  }
   0x3   :  { %s1990_s19 = smov 0   ;;  %s1992_s20 = smov 0  }
   0x4 LB: > { %s1678_s21 = sadd.s32 4294967295, %s1950_s20   ;;  %s1679_s22 = sadd.s32 4294967294, %s1950_s20   ;;  %s1950_s20 = sphi %s1992_s20, %s18_s20   ;;  %s1946_s19 = sphi %s1990_s19, %s2244_s19   ;;  %s1942_s18 = sphi %s1988_s18, %s2243_s18   ;;  %s1938_s17 = sphi %s1986_s17, %s2242_s17   ;;  %s1934_s16 = sphi %s1984_s16, %s2241_s16   ;;  %s1930_s15 = sphi %s1982_s15, %s2240_s15  }
   0x5   : > { %s30_s23 = sadd.s32 1, %s1946_s19  ;;  %s39_s24 = sadd.s32 1, %s1938_s17 }
   0x6   : > { %p32_p0 = scmp.ge.s32.totalorder %s30_s23, 2  ;;  %p46_p1 = scmp.ne.s32.totalorder %s1938_s17, %s1934_s16 }
   0x7   : > { %p47_p2 = scmp.eq.s32.totalorder %s1950_s20, 0  ;;  %p134_p3 = scmp.eq.s32.totalorder %s1678_s21, 1 }
   0x8   : > { %s2246_s23 = smov (%p32_p0, %s30_s23), 0  ;;  %p165_p6 = scmp.ne.s32.totalorder %s1934_s16, %s1930_s15 }
   0x9   : > { %p2021_p4 = por %p47_p2, %p46_p1  ;;  %p2025_p5 = por %p134_p3, %p46_p1 }
   0xa   : > { %s34_s27 = ssub.s32 %s1946_s19, %s2246_s23  ;;  %p166_p8 = scmp.eq.s32.totalorder %s1679_s22, 1 }
   0xb   : > { %p37_p7 = scmp.eq.s32.totalorder %s34_s27, 0  ;;  %p2235_p10 = scmp.ge.s32.totalorder %s1950_s20, 2 }
   0xc   : > { %p2036_p9 = por %p166_p8, %p165_p6 }
   0xd   : > { %s2034_s28 = scalar_select %p37_p7, %s1938_s17, %s39_s24  }
   0xe   : > { %182 = sbr.rel (%p2235_p10) target bundleno = 51 (0x33), region = 16 }
  0x15   : > { %185 = sbr.rel (!%p2021_p4) target bundleno = 31 (0x1f), region = 20  ;;  %s187_s30 = sand.u32 (%p2021_p4), 1, %s1938_s17  }
  0x16   : > { %s1784_s5 = smul.u32 (%p2021_p4), 12, %s1946_s19  ;;  %s1682_s6 = sshll.u32 (%p2021_p4), %s187_s30, 5 }
  0x17   : > { %s189_s10 = scalar_lea.vmem (%p2021_p4), [#allocation2], %s1682_s6 }
  0x18   : > { %s193_s9 = scalar_lea.vmem (%p2021_p4), %s2230_s0, %s1784_s5 }
  0x19   : > { %v209_v0 = vld [vmem:[%s193_s9] sm:$0xf] (%p2021_p4)  ;;  %v211_v1 = vld [vmem:[%s193_s9 + $0x18] sm:$0xf] (%p2021_p4)  ;;  %v213_v2 = vld [vmem:[%s193_s9 + $0x30] sm:$0xf] (%p2021_p4) }
  0x1a   : > { %210 = vst [vmem:[%s189_s10] sm:$0xf] (%p2021_p4), %v209_v0  ;;  %212 = vst [vmem:[%s189_s10 + $0x4] sm:$0xf] (%p2021_p4), %v211_v1  ;;  %v215_v3 = vld [vmem:[%s193_s9 + $0x48] sm:$0xf] (%p2021_p4) }
  0x1b   : > { %214 = vst [vmem:[%s189_s10 + $0x8] sm:$0xf] (%p2021_p4), %v213_v2  ;;  %v217_v4 = vld [vmem:[%s193_s9 + $0x60] sm:$0xf] (%p2021_p4)  ;;  %v219_v5 = vld [vmem:[%s193_s9 + $0x78] sm:$0xf] (%p2021_p4) }
  0x1c   : > { %216 = vst [vmem:[%s189_s10 + $0xc] sm:$0xf] %v215_v3  ;;  %218 = vst [vmem:[%s189_s10 + $0x10] sm:$0xf] %v217_v4  ;;  %v221_v6 = vld [vmem:[%s193_s9 + $0x90] sm:$0xf] }
  0x1d   : > { %220 = vst [vmem:[%s189_s10 + $0x14] sm:$0xf] %v219_v5  ;;  %v223_v7 = vld [vmem:[%s193_s9 + $0xa8] sm:$0xf]  ;;  %222 = vst [vmem:[%s189_s10 + $0x18] sm:$0xf] %v221_v6 }
  0x1e   : > { %224 = vst [vmem:[%s189_s10 + $0x1c] sm:$0xf] %v223_v7 }
  0x1f PF: > { %263 = sbr.rel (!%p2021_p4) target bundleno = 41 (0x29), region = 61  ;;  %s265_s11 = sand.u32 (%p2021_p4), 1, %s1938_s17  }
  0x20   : > { %s1685_s12 = smul.u32 (%p2021_p4), 12, %s1946_s19  ;;  %s1684_s13 = sshll.u32 (%p2021_p4), %s265_s11, 5 }
  0x21   : > { %s267_s24 = scalar_lea.vmem (%p2021_p4), [#allocation3], %s1684_s13 }
  0x22   : > { %s1571_s22 = scalar_lea.vmem (%p2021_p4), %s2231_s1, %s1685_s12 }
  0x23   : > { %v1686_v8 = vld [vmem:[%s1571_s22 + $0x4] sm:$0xf] (%p2021_p4)  ;;  %v1687_v9 = vld [vmem:[%s1571_s22 + $0x1c] sm:$0xf] (%p2021_p4)  ;;  %v1688_v10 = vld [vmem:[%s1571_s22 + $0x34] sm:$0xf] (%p2021_p4) }
  0x24   : > { %289 = vst [vmem:[%s267_s24] sm:$0xf] (%p2021_p4), %v1686_v8  ;;  %291 = vst [vmem:[%s267_s24 + $0x4] sm:$0xf] (%p2021_p4), %v1687_v9  ;;  %v1689_v11 = vld [vmem:[%s1571_s22 + $0x4c] sm:$0xf] (%p2021_p4) }
  0x25   : > { %293 = vst [vmem:[%s267_s24 + $0x8] sm:$0xf] (%p2021_p4), %v1688_v10  ;;  %v1690_v12 = vld [vmem:[%s1571_s22 + $0x64] sm:$0xf] (%p2021_p4)  ;;  %v1691_v13 = vld [vmem:[%s1571_s22 + $0x7c] sm:$0xf] (%p2021_p4) }
  0x26   : > { %295 = vst [vmem:[%s267_s24 + $0xc] sm:$0xf] %v1689_v11  ;;  %297 = vst [vmem:[%s267_s24 + $0x10] sm:$0xf] %v1690_v12  ;;  %v1692_v14 = vld [vmem:[%s1571_s22 + $0x94] sm:$0xf] }
  0x27   : > { %299 = vst [vmem:[%s267_s24 + $0x14] sm:$0xf] %v1691_v13  ;;  %v1693_v15 = vld [vmem:[%s1571_s22 + $0xac] sm:$0xf]  ;;  %301 = vst [vmem:[%s267_s24 + $0x18] sm:$0xf] %v1692_v14 }
  0x28   : > { %303 = vst [vmem:[%s267_s24 + $0x1c] sm:$0xf] %v1693_v15 }
  0x29 PF: > { %342 = sbr.rel (!%p2021_p4) target bundleno = 51 (0x33), region = 102  ;;  %s344_s27 = sand.u32 (%p2021_p4), 1, %s1938_s17  }
  0x2a   : > { %s1695_s30 = smul.u32 (%p2021_p4), 12, %s1946_s19  ;;  %s1694_s5 = sshll.u32 (%p2021_p4), %s344_s27, 5 }
  0x2b   : > { %s346_s9 = scalar_lea.vmem (%p2021_p4), [#allocation4], %s1694_s5 }
  0x2c   : > { %s1578_s8 = scalar_lea.vmem (%p2021_p4), %s2232_s2, %s1695_s30 }
  0x2d   : > { %v1696_v16 = vld [vmem:[%s1578_s8 + $0x8] sm:$0xf] (%p2021_p4)  ;;  %v1697_v17 = vld [vmem:[%s1578_s8 + $0x20] sm:$0xf] (%p2021_p4)  ;;  %v1698_v18 = vld [vmem:[%s1578_s8 + $0x38] sm:$0xf] (%p2021_p4) }
  0x2e   : > { %368 = vst [vmem:[%s346_s9] sm:$0xf] (%p2021_p4), %v1696_v16  ;;  %370 = vst [vmem:[%s346_s9 + $0x4] sm:$0xf] (%p2021_p4), %v1697_v17  ;;  %v1699_v19 = vld [vmem:[%s1578_s8 + $0x50] sm:$0xf] (%p2021_p4) }
  0x2f   : > { %372 = vst [vmem:[%s346_s9 + $0x8] sm:$0xf] (%p2021_p4), %v1698_v18  ;;  %v1700_v20 = vld [vmem:[%s1578_s8 + $0x68] sm:$0xf] (%p2021_p4)  ;;  %v1701_v21 = vld [vmem:[%s1578_s8 + $0x80] sm:$0xf] (%p2021_p4) }
  0x30   : > { %374 = vst [vmem:[%s346_s9 + $0xc] sm:$0xf] %v1699_v19  ;;  %376 = vst [vmem:[%s346_s9 + $0x10] sm:$0xf] %v1700_v20  ;;  %v1702_v22 = vld [vmem:[%s1578_s8 + $0x98] sm:$0xf] }
  0x31   : > { %378 = vst [vmem:[%s346_s9 + $0x14] sm:$0xf] %v1701_v21  ;;  %v1703_v23 = vld [vmem:[%s1578_s8 + $0xb0] sm:$0xf]  ;;  %380 = vst [vmem:[%s346_s9 + $0x18] sm:$0xf] %v1702_v22 }
  0x32   : > { %382 = vst [vmem:[%s346_s9 + $0x1c] sm:$0xf] %v1703_v23 }
  0x33 PF: > { %p1704_p11 = scmp.ge.s32.totalorder %s1950_s20, 1  ;;  %p420_p12 = scmp.lt.s32.totalorder %s1950_s20, 3 }
  0x35   : > { %p421_p13 = pnand %p1704_p11, %p420_p12 }
  0x36   : > { %s2067_s25 = sand.u32 (!%p421_p13), 1, %s1934_s16   ;;  %v496_v24 = vlaneseq (!%p421_p13)  ;;  %v1952_v25 = vmov (!%p421_p13), 0.0   ;;  %v1953_v26 = vmov (!%p421_p13), 1983009808   ;;  %v1954_v29 = vmov (!%p421_p13), 1934713408  }
  0x37   : > { %424 = sbr.rel (%p421_p13) target bundleno = 864 (0x360), region = 143  ;;  %1744 = vmatprep.subr.mxu0 (!%p421_p13), %v1952_v25  ;;  %s2071_s10 = sshll.u32 (!%p421_p13), %s2067_s25, 5  ;;  %v494_v27 = vunpack.c.l.s4 (!%p421_p13), %v1953_v26  ;;  %1749 = vmatprep.subr.mxu1 (!%p421_p13), %v1952_v25  ;;  %v527_v30 = vunpack.c.l.s4 (!%p421_p13), %v1954_v29  ;;  %vm1955_vm0 = vmmov (!%p421_p13), 0   ;;  %vm482_vm1 = vcmask (!%p421_p13), 64512  }
  0x38   : > { %v497_v28 = vshrl.u32 (!%p421_p13), %v496_v24, 7  ;;  %1746 = vmatprep.mubr.msk.f32.mxu0 (!%p421_p13), %vm1955_vm0, %v1952_v25  ;;  %1751 = vmatprep.mubr.msk.f32.mxu1 (!%p421_p13), %vm1955_vm0, %v1952_v25  ;;  %s436_s11 = scalar_lea.vmem (!%p421_p13), [#allocation3], %s2071_s10  ;;  %s429_s12 = scalar_lea.vmem (!%p421_p13), [#allocation2], %s2071_s10  ;;  %vm1421_vm2 = vcmask (!%p421_p13), 60416  }
  0x39   : > { %v495_v31 = vunpack.c.0.s8 (!%p421_p13), %v494_v27  ;;  %v528_v32 = vunpack.c.0.s8 (!%p421_p13), %v527_v30  ;;  %v1844_v34 = vld [vmem:[%s436_s11] ss:$8 sps:$4 sm:$0xff] (!%p421_p13)   ;;  %v1845_v35 = vld [vmem:[%s436_s11 + $0x4] ss:$8 sps:$4 sm:$0xff] (!%p421_p13)   ;;  %v1846_v36 = vld [vmem:[%s436_s11 + $0x10] ss:$8 sps:$4 sm:$0xff] (!%p421_p13)  }
  0x3a   : > { %v1847_v37 = vld [vmem:[%s436_s11 + $0x14] ss:$8 sps:$4 sm:$0xff] (!%p421_p13)   ;;  %v1848_v43 = vld [vmem:[%s429_s12] ss:$8 sps:$4 sm:$0xff] (!%p421_p13)   ;;  %v1849_v48 = vld [vmem:[%s429_s12 + $0x4] ss:$8 sps:$4 sm:$0xff] (!%p421_p13)  }
  0x3b   : > { %v2079_v33 = vsub.s32 (!%p421_p13), %v495_v31, %v497_v28  ;;  %v2083_v39 = vsub.s32 (!%p421_p13), %v528_v32, %v497_v28  ;;  %v1850_v49 = vld [vmem:[%s429_s12 + $0x10] ss:$8 sps:$4 sm:$0xff] (!%p421_p13)   ;;  %v1851_v50 = vld [vmem:[%s429_s12 + $0x14] ss:$8 sps:$4 sm:$0xff] (!%p421_p13)   ;;  %s443_s13 = scalar_lea.vmem (!%p421_p13), [#allocation4], %s2071_s10  ;;  %s1709_s14 = sshll.u32 (!%p421_p13), %s2067_s25, 3 }
  0x3c   : > { %s2140_s21 = scalar_lea.vmem (!%p421_p13), [#allocation6], %s1709_s14  ;;  %s470_s22 = scalar_lea.vmem (!%p421_p13), [#allocation5], %s2071_s10 }
  0x3d   : > { %v575_v38 = vrot.slane (!%p421_p13), %v1844_v34, %v2079_v33  ;;  %v583_v40 = vrot.slane (!%p421_p13), %v1845_v35, %v2079_v33  ;;  %v591_v41 = vrot.slane (!%p421_p13), %v1846_v36, %v2079_v33  ;;  %v599_v42 = vrot.slane (!%p421_p13), %v1847_v37, %v2079_v33  ;;  %483 = vst.msk [vmem:[%s2140_s21] sm:$0xff] (!%p421_p13), %vm482_vm1, %v1952_v25  ;;  %s1446_s24 = scalar_lea.sflag (!%p421_p13), [#allocation7], %s2067_s25 }
  0x3e   : > { %v499_v51 = vrot.slane %v1848_v43, %v2079_v33  ;;  %v507_v54 = vrot.slane %v1849_v48, %v2079_v33  ;;  %v515_v55 = vrot.slane %v1850_v49, %v2079_v33  ;;  %v523_v56 = vrot.slane %v1851_v50, %v2079_v33  ;;  %v1854_v48 = vld [vmem:[%s443_s13 + $0x10] ss:$8 sps:$4 sm:$0xff]   ;;  %v1855_v49 = vld [vmem:[%s443_s13 + $0x14] ss:$8 sps:$4 sm:$0xff]   ;;  %s1724_s27 = sshll.u32 (%p2025_p5), %s1942_s18, 2 }
  0x3f   : > { %v600_v44 = vcombine.low %v575_v38, %v583_v40  ;;  %v601_v45 = vcombine.high %v575_v38, %v583_v40  ;;  %v616_v46 = vcombine.low %v591_v41, %v599_v42  ;;  %v617_v47 = vcombine.high %v591_v41, %v599_v42  ;;  %s1455_s6 = scalar_lea.vmem (%p2025_p5), %s2233_s3, %s1724_s27 }
  0x40   : > { %v524_v60 = vcombine.low %v499_v51, %v507_v54  ;;  %v525_v61 = vcombine.high %v499_v51, %v507_v54  ;;  %v540_v63 = vcombine.low %v515_v55, %v523_v56  ;;  %v541_v0 = vcombine.high %v515_v55, %v523_v56 }
  0x41   : > { %v608_v52 = vrot.slane %v600_v44, %v2083_v39  ;;  %v624_v53 = vrot.slane %v616_v46, %v2083_v39  ;;  %v615_v57 = vrot.slane %v601_v45, %v2083_v39  ;;  %v631_v58 = vrot.slane %v617_v47, %v2083_v39  ;;  %v1852_v46 = vld [vmem:[%s443_s13] ss:$8 sps:$4 sm:$0xff]   ;;  %v1853_v47 = vld [vmem:[%s443_s13 + $0x4] ss:$8 sps:$4 sm:$0xff]  }
  0x42   : > { %v532_v1 = vrot.slane %v524_v60, %v2083_v39  ;;  %v548_v2 = vrot.slane %v540_v63, %v2083_v39  ;;  %v539_v3 = vrot.slane %v525_v61, %v2083_v39  ;;  %v555_v4 = vrot.slane %v541_v0, %v2083_v39 }
  0x43   : > { %v632_v59 = vcombine.low %v608_v52, %v624_v53  ;;  %v633_v62 = vcombine.high %v608_v52, %v624_v53  ;;  %v634_v5 = vcombine.low %v615_v57, %v631_v58  ;;  %v635_v8 = vcombine.high %v615_v57, %v631_v58 }
  0x44   : > { %v556_v6 = vcombine.low %v532_v1, %v548_v2  ;;  %v557_v7 = vcombine.high %v532_v1, %v548_v2  ;;  %v558_v9 = vcombine.low %v539_v3, %v555_v4  ;;  %v559_v10 = vcombine.high %v539_v3, %v555_v4 }
  0x45   : > { %1745 = vmatpush3.xpose.msk.msra.mxu0 %vm482_vm1, %v632_v59  ;;  %1750 = vmatpush3.xpose.msk.msra.mxu1 %vm482_vm1, %v633_v62  ;;  %v651_v50 = vrot.slane %v1852_v46, %v2079_v33  ;;  %v659_v51 = vrot.slane %v1853_v47, %v2079_v33  ;;  %v667_v52 = vrot.slane %v1854_v48, %v2079_v33 }
  0x46   : > { %1754 = vmatprep.subr.mxu0 %v1952_v25  ;;  %1759 = vmatprep.subr.mxu1 %v1952_v25  ;;  %v675_v53 = vrot.slane %v1855_v49, %v2079_v33 }
  0x47   : > { %v676_v54 = vcombine.low %v651_v50, %v659_v51  ;;  %v677_v56 = vcombine.high %v651_v50, %v659_v51 }
  0x48   : > { %1747 = vmatmul.mubr.msk.f32.vlgmr.msra.gmra.mrb[0].mxu0 %vm482_vm1, %v556_v6  ;;  %1752 = vmatmul.mubr.msk.f32.vlgmr.msra.gmra.mrb[0].mxu1 %vm482_vm1, %v557_v7  ;;  %v692_v55 = vcombine.low %v667_v52, %v675_v53  ;;  %v693_v57 = vcombine.high %v667_v52, %v675_v53 }
  0x49   : > { %1755 = vmatpush3.xpose.msk.msra.mxu0 %vm482_vm1, %v634_v5  ;;  %1756 = vmatprep.mubr.msk.f32.mxu0 %vm1955_vm0, %v1952_v25  ;;  %v684_v58 = vrot.slane %v676_v54, %v2083_v39  ;;  %v691_v60 = vrot.slane %v677_v56, %v2083_v39 }
  0x4a   : > { %1760 = vmatpush3.xpose.msk.msra.mxu1 %vm482_vm1, %v635_v8  ;;  %1761 = vmatprep.mubr.msk.f32.mxu1 %vm1955_vm0, %v1952_v25  ;;  %v700_v59 = vrot.slane %v692_v55, %v2083_v39  ;;  %v707_v61 = vrot.slane %v693_v57, %v2083_v39 }
  0x4b   : > { %1764 = vmatprep.subr.mxu0 %v1952_v25  ;;  %1769 = vmatprep.subr.mxu1 %v1952_v25 }
  0x4c   : > { %1757 = vmatmul.mubr.msk.f32.vlgmr.msra.gmra.mrb[2].mxu0 %vm482_vm1, %v558_v9  ;;  %v708_v62 = vcombine.low %v684_v58, %v700_v59  ;;  %v709_v63 = vcombine.high %v684_v58, %v700_v59  ;;  %v710_v0 = vcombine.low %v691_v60, %v707_v61  ;;  %v711_v1 = vcombine.high %v691_v60, %v707_v61 }
  0x4d   : > { %1762 = vmatmul.mubr.msk.f32.vlgmr.msra.gmra.mrb[2].mxu1 %vm482_vm1, %v559_v10  ;;  %1766 = vmatprep.mubr.msk.f32.mxu0 %vm1955_vm0, %v1952_v25 }
  0x4e   : > { %1771 = vmatprep.mubr.msk.f32.mxu1 %vm1955_vm0, %v1952_v25  ;;  %1765 = vmatpush3.msra.mxu0 %v708_v62 }
  0x4f   : > { %1770 = vmatpush3.msra.mxu1 %v709_v63  ;;  %1774 = vmatprep.subr.mxu0 %v1952_v25 }
  0x50   : > { %1779 = vmatprep.subr.mxu1 %v1952_v25 }
 0x11b   : > { %v785_v11 = vpop.f32.mrb[0].mxu0  ;;  %v861_v12 = vpop.f32.mrb[0].mxu1 }
 0x11c   : > { %v1748_v13 = vpop.f32.mrb[1].mxu0  ;;  %v1017_v14 = vsel %vm482_vm1, %v785_v11, -inf  ;;  %v1753_v15 = vpop.f32.mrb[1].mxu1  ;;  %v1020_v16 = vsel %vm482_vm1, %v861_v12, -inf }
 0x11d   : > { %1018 = vmax.xlane.f32.xlu0 %v1017_v14 }
 0x11f   : > { %v937_v17 = vpop.f32.mrb[2].mxu0 }
 0x120   : > { %v1758_v18 = vpop.f32.mrb[3].mxu0  ;;  %v1023_v19 = vsel %vm482_vm1, %v937_v17, -inf  ;;  %v1013_v20 = vpop.f32.mrb[2].mxu1 }
 0x121   : > { %1021 = vmax.xlane.f32.xlu0 %v1020_v16  ;;  %1024 = vmax.xlane.f32.xlu1 %v1023_v19  ;;  %v1763_v21 = vpop.f32.mrb[3].mxu1  ;;  %v1026_v22 = vsel %vm482_vm1, %v1013_v20, -inf }
 0x122   : > { %v1430_v21 = vld [vmem:[%s2140_s21] sm:$0xff] }
 0x125   : > { %1027 = vmax.xlane.f32.xlu1 %v1026_v22 }
 0x1aa   : > { %v1019_v23 = vpop.xlane.xlu0 %1018 }
 0x1ab   : > { %v1029_v24 = vsub.f32 %v785_v11, %v1019_v23 }
 0x1ad   : > { %v1033_v26 = vmul.f32 1.442695, %v1029_v24 }
 0x1ae   : > { %v1022_v27 = vpop.xlane.xlu0 %1021  ;;  %v1025_v28 = vpop.xlane.xlu1 %1024 }
 0x1af   : > { %1856 = vpow2.f32 %v1033_v26  ;;  %v1030_v29 = vsub.f32 %v861_v12, %v1022_v27  ;;  %v1031_v30 = vsub.f32 %v937_v17, %v1025_v28 }
 0x1b1   : > { %v1035_v31 = vmul.f32 1.442695, %v1030_v29  ;;  %v1037_v32 = vmul.f32 1.442695, %v1031_v30 }
 0x1b2   : > { %v1028_v34 = vpop.xlane.xlu1 %1027 }
 0x1b3   : > { %1858 = vpow2.f32 %v1035_v31  ;;  %v1032_v35 = vsub.f32 %v1013_v20, %v1028_v34 }
 0x1b4   : > { %1860 = vpow2.f32 %v1037_v32 }
 0x1b5   : > { %v1039_v36 = vmul.f32 1.442695, %v1032_v35 }
 0x1b7   : > { %1862 = vpow2.f32 %v1039_v36 }
 0x1b9   : > { %v1857_v37 = vpop.eup %1856 }
 0x1ba   : > { %v1041_v38 = vsel %vm482_vm1, %v1857_v37, 0.0 }
 0x1bb   : > { %1042 = vadd.xlane.f32.xlu0 %v1041_v38 }
 0x1bd   : > { %v1859_v40 = vpop.eup %1858 }
 0x1be   : > { %v1861_v41 = vpop.eup %1860  ;;  %v1044_v42 = vsel %vm482_vm1, %v1859_v40, 0.0 }
 0x1bf   : > { %1045 = vadd.xlane.f32.xlu1 %v1044_v42  ;;  %v1047_v43 = vsel %vm482_vm1, %v1861_v41, 0.0 }
 0x1c0   : > { %1048 = vadd.xlane.f32.xlu0 %v1047_v43 }
 0x1c1   : > { %v1863_v44 = vpop.eup %1862 }
 0x1c2   : > { %v1050_v45 = vsel %vm482_vm1, %v1863_v44, 0.0 }
 0x1c3   : > { %1051 = vadd.xlane.f32.xlu1 %v1050_v45 }
 0x248   : > { %v1043_v2 = vpop.xlane.xlu0 %1042 }
 0x249   : > { %1864 = vrcp.f32 %v1043_v2 }
 0x24c   : > { %v1046_v3 = vpop.xlane.xlu1 %1045 }
 0x24d   : > { %v1049_v4 = vpop.xlane.xlu0 %1048  ;;  %1866 = vrcp.f32 %v1046_v3 }
 0x24e   : > { %1868 = vrcp.f32 %v1049_v4 }
 0x250   : > { %v1052_v5 = vpop.xlane.xlu1 %1051 }
 0x251   : > { %1870 = vrcp.f32 %v1052_v5 }
 0x253   : > { %v1865_v6 = vpop.eup %1864 }
 0x254   : > { %v1057_v7 = vmul.f32 %v1865_v6, %v1857_v37 }
 0x256   : > { %1767 = vmatmul.mubr.msk.f32.vlgmr.msra.gmra.mrb[4].mxu0 %vm482_vm1, %v1057_v7  ;;  %v1431_v12 = vsel %vm482_vm1, %v1057_v7, 0.0 }
 0x257   : > { %v1867_v8 = vpop.eup %1866  ;;  %1775 = vmatpush3.msra.mxu0 %v710_v0  ;;  %1776 = vmatprep.mubr.msk.f32.mxu0 %vm1955_vm0, %v1952_v25 }
 0x258   : > { %v1869_v9 = vpop.eup %1868  ;;  %v1058_v10 = vmul.f32 %v1867_v8, %v1859_v40 }
 0x259   : > { %v1059_v11 = vmul.f32 %v1869_v9, %v1861_v41 }
 0x25a   : > { %v1432_v13 = vsel %vm482_vm1, %v1058_v10, 0.0  ;;  %1772 = vmatmul.mubr.msk.f32.vlgmr.msra.gmra.mrb[4].mxu1 %vm482_vm1, %v1058_v10 }
 0x25b   : > { %v1871_v14 = vpop.eup %1870  ;;  %v1433_v15 = vadd.f32 %v1432_v13, %v1431_v12  ;;  %1777 = vmatmul.mubr.msk.f32.vlgmr.msra.gmra.mrb[6].mxu0 %vm482_vm1, %v1059_v11  ;;  %1780 = vmatpush3.msra.mxu1 %v711_v1  ;;  %v1434_v16 = vsel %vm482_vm1, %v1059_v11, 0.0 }
 0x25c   : > { %v1060_v17 = vmul.f32 %v1871_v14, %v1863_v44  ;;  %1781 = vmatprep.mubr.msk.f32.mxu1 %vm1955_vm0, %v1952_v25 }
 0x25d   : > { %v1435_v18 = vadd.f32 %v1434_v16, %v1433_v15 }
 0x25e   : > { %v1436_v19 = vsel %vm482_vm1, %v1060_v17, 0.0  ;;  %1782 = vmatmul.mubr.msk.f32.vlgmr.msra.gmra.mrb[6].mxu1 %vm482_vm1, %v1060_v17 }
 0x25f   : > { %v1437_v20 = vadd.f32 %v1436_v19, %v1435_v18 }
 0x261   : > { %v1438_v22 = vmul.f32 0.25, %v1437_v20 }
 0x263   : > { %v1439_v23 = vadd.f32 %v1438_v22, %v1430_v21 }
 0x265   : > { %1440 = vst.msk [vmem:[%s2140_s21] sm:$0xff] %vm482_vm1, %v1439_v23 }
 0x329   : > { %v1130_v24 = vpop.f32.mrb[4].mxu0 }
 0x32a   : > { %v1768_v26 = vpop.f32.mrb[5].mxu0 }
 0x32d   : > { %v1203_v27 = vpop.f32.mrb[4].mxu1 }
 0x32e   : > { %v1276_v28 = vpop.f32.mrb[6].mxu0  ;;  %v1773_v29 = vpop.f32.mrb[5].mxu1 }
 0x32f   : > { %v1353_v30 = vcombine.low %v1130_v24, %v1276_v28  ;;  %v1354_v31 = vcombine.high %v1130_v24, %v1276_v28  ;;  %v1778_v32 = vpop.f32.mrb[7].mxu0 }
 0x331   : > { %v1349_v34 = vpop.f32.mrb[6].mxu1  ;;  %v1361_v38 = vrot.slane %v1353_v30, %v2079_v33  ;;  %v1368_v40 = vrot.slane %v1354_v31, %v2079_v33 }
 0x332   : > { %v1369_v35 = vcombine.low %v1203_v27, %v1349_v34  ;;  %v1370_v36 = vcombine.high %v1203_v27, %v1349_v34  ;;  %v1783_v37 = vpop.f32.mrb[7].mxu1 }
 0x334   : > { %v1377_v41 = vrot.slane %v1369_v35, %v2079_v33  ;;  %v1384_v42 = vrot.slane %v1370_v36, %v2079_v33 }
 0x336   : > { %v1385_v43 = vcombine.low %v1361_v38, %v1377_v41  ;;  %v1386_v44 = vcombine.high %v1361_v38, %v1377_v41  ;;  %v1401_v45 = vcombine.low %v1368_v40, %v1384_v42  ;;  %v1402_v46 = vcombine.high %v1368_v40, %v1384_v42 }
 0x338   : > { %v1393_v47 = vrot.slane %v1385_v43, %v2083_v39  ;;  %v1400_v48 = vrot.slane %v1386_v44, %v2083_v39  ;;  %v1409_v49 = vrot.slane %v1401_v45, %v2083_v39  ;;  %v1416_v50 = vrot.slane %v1402_v46, %v2083_v39  ;;  %1452 = sbr.rel (!%p2025_p5) target bundleno = 840 (0x348), region = 163 }
 0x33a   : > { %v1417_v51 = vcombine.high %v1393_v47, %v1952_v25  ;;  %v1418_v52 = vcombine.high %v1400_v48, %v1952_v25  ;;  %v1419_v33 = vcombine.high %v1409_v49, %v1952_v25  ;;  %v1420_v53 = vcombine.high %v1416_v50, %v1952_v25  ;;  %1422 = vst.msk [vmem:[%s470_s22] sm:$0xf] %vm1421_vm2, %v1393_v47 }
 0x33b   : > { %1424 = vst.msk [vmem:[%s470_s22 + $0x8] sm:$0xf] %vm1421_vm2, %v1400_v48  ;;  %1426 = vst.msk [vmem:[%s470_s22 + $0x10] sm:$0xf] %vm1421_vm2, %v1409_v49 }
 0x33c   : > { %1428 = vst.msk [vmem:[%s470_s22 + $0x18] sm:$0xf] %vm1421_vm2, %v1416_v50  ;;  %1423 = vst.msk [vmem:[%s470_s22 + $0x4] sm:$0xf] %vm1421_vm2, %v1417_v51 }
 0x33d   : > { %1425 = vst.msk [vmem:[%s470_s22 + $0xc] sm:$0xf] %vm1421_vm2, %v1418_v52  ;;  %1427 = vst.msk [vmem:[%s470_s22 + $0x14] sm:$0xf] %vm1421_vm2, %v1419_v33 }
 0x33e   : > { %1429 = vst.msk [vmem:[%s470_s22 + $0x1c] sm:$0xf] %vm1421_vm2, %v1420_v53 }
 0x341   : > { %v1471_v25 = vld [vmem:[%s470_s22] sm:$0xf] }
 0x342   : > { %v1475_v54 = vld [vmem:[%s470_s22 + $0x8] sm:$0xf]  ;;  %v1479_v56 = vld [vmem:[%s470_s22 + $0x10] sm:$0xf]  ;;  %1472 = vst [vmem:[%s1455_s6] sm:$0xf] %v1471_v25 }
 0x343   : > { %v1473_v39 = vld [vmem:[%s470_s22 + $0x4] sm:$0xf]  ;;  %1476 = vst [vmem:[%s1455_s6 + $0x10] sm:$0xf] %v1475_v54  ;;  %1480 = vst [vmem:[%s1455_s6 + $0x20] sm:$0xf] %v1479_v56 }
 0x344   : > { %v1477_v55 = vld [vmem:[%s470_s22 + $0xc] sm:$0xf]  ;;  %1474 = vst [vmem:[%s1455_s6 + $0x8] sm:$0xf] %v1473_v39  ;;  %v1481_v57 = vld [vmem:[%s470_s22 + $0x14] sm:$0xf] }
 0x345   : > { %1478 = vst [vmem:[%s1455_s6 + $0x18] sm:$0xf] %v1477_v55  ;;  %v1483_v58 = vld [vmem:[%s470_s22 + $0x18] sm:$0xf]  ;;  %v1485_v59 = vld [vmem:[%s470_s22 + $0x1c] sm:$0xf] }
 0x346   : > { %1482 = vst [vmem:[%s1455_s6 + $0x28] sm:$0xf] %v1481_v57  ;;  %1484 = vst [vmem:[%s1455_s6 + $0x30] sm:$0xf] %v1483_v58 }
 0x347   : > { %1486 = vst [vmem:[%s1455_s6 + $0x38] sm:$0xf] %v1485_v59 }
 0x348 PF: > { %s1725_s7 = sshll.u32 %s1942_s18, 7  ;;  %s1532_s8 = sshll.u32 %s2140_s21, 4  ;;  %s1533_s8 = int_to_ptr.vmem [resolvable:$true] %s1532_s8 }
 0x349   : > { %s1530_s11 = scalar_lea.hbm %s2234_s4, %s1725_s7  ;;  %s1872_s12 = scalar_lea.vmem %s1533_s8, 128 }
 0x34a   : > { %p1873_p0 = scmp.ne.s32.totalorder %s1533_s8, %s1872_s12  ;;  %s1956_s13 = smov [#allocation6]  }
 0x34b   : > { %s1876_s14 = sshll.u32 %s1956_s13, 4  ;;  %s1877_s14 = int_to_ptr.vmem [resolvable:$false] %s1876_s14 }
 0x34c   : > { %p1874_p1 = pnand %p1873_p0, %p2025_p5  ;;  %s1878_s22 = scalar_lea.vmem %s1877_s14, 256 }
 0x34d   : > { %p1879_p3 = scmp.lt.s32.totalorder %s1533_s8, %s1877_s14  ;;  %p1880_p4 = scmp.lt.s32.totalorder %s1878_s22, %s1872_s12 }
 0x34e   : > { %p1875_p2 = pneg %p1874_p1 }
 0x34f   : > { %p1881_p6 = por %p1880_p4, %p1879_p3 }
 0x351   : > { %p1882_p7 = pnand %p1881_p6, %p1875_p2 }
 0x353   : > { %1885 = shalt.err (!%p1882_p7)
}
 0x354   : > { %s1886_s18 = scalar_lea.hbm %s1530_s11, 128  ;;  %s1890_s30 = scalar_lea.hbm %s2234_s4, 256 }
 0x355   : > { %p1887_p8 = scmp.ne.s32.totalorder %s1530_s11, %s1886_s18  ;;  %p1891_p13 = scmp.lt.u32.totalorder %s1530_s11, %s2234_s4 }
 0x356   : > { %p1892_p0 = scmp.lt.u32.totalorder %s1890_s30, %s1886_s18  ;;  %p1894_p10 = scmp.lt.u32.totalorder %s1886_s18, %s1530_s11 }
 0x357   : > { %p1888_p11 = pnand %p1887_p8, %p2025_p5 }
 0x358   : > { %p1893_p1 = por %p1892_p0, %p1891_p13 }
 0x359   : > { %p1889_p12 = pneg %p1888_p11 }
 0x35a   : > { %p1895_p3 = por %p1894_p10, %p1893_p1 }
 0x35c   : > { %p1896_p2 = pnand %p1895_p3, %p1889_p12 }
 0x35e   : > { %1899 = shalt.err (!%p1896_p2)
}
 0x35f   : > { %1785 = dma.vmem_to_hbm [thread:$0]  (%p2025_p5), %s1533_s8, 128, %s1530_s11, %s1446_s24  }
 0x360 PF: > { %s1551_s7 = sand.u32 1, %s1930_s15   ;;  %p2239_p4 = scmp.ge.s32.totalorder %s1950_s20, 2 }
 0x361   : > { %s1552_s9 = scalar_lea.sflag [#allocation7], %s1551_s7 }
 0x362   : > { %p1788_p6 = pnand %p2239_p4, %p2036_p9 }
 0x364   : > { %1925 = dma.done.wait (!%p1788_p6), %s1552_s9, 128  }
 0x365   : > { %1927 = vsyncadd (!%p1788_p6), %s1552_s9, 4294967168  ;;  %s18_s20 = sadd.s32 1, %s1950_s20   ;;  %s2240_s15 = smov %s1934_s16 }
 0x366   : > { %p15_p10 = scmp.ge.s32.totalorder %s18_s20, 4   ;;  %s2241_s16 = smov %s1938_s17 }
 0x367   : > { %s2242_s17 = smov %s2034_s28  ;;  %s2243_s18 = smov %s1946_s19 }
 0x368   : > { %s2244_s19 = smov %s2246_s23  ;;  %17 = sbr.rel (!%p15_p10) target bundleno = 4 (0x4), region = 268 }
 0x36f   :  { %1557 = vsyncpa [#allocation7], 1 }
 0x370   :  { %1559 = vsyncpa [#allocation7 + $0x1], 1 }

// kernel: multihead_attention_super_forward.5
= control target key start
LH: loop header
LB: loop body
LE: loop exit
PB: predicated region body
PF: predicated region fallthrough
CT: control target
= control target key end

     0   :  { %vm26_vm0 = vcmask 261120   ;;  %s265_s0 = inlined_call_operand.vmem [shape: f32[16,32], index: 0, kind: input, shape index: {}]   ;;  %s266_s1 = inlined_call_operand.vmem [shape: f32[32,32], index: 1, kind: input, shape index: {}]   ;;  %s267_s2 = inlined_call_operand.vmem [shape: f32[1,32], index: 2, kind: input, shape index: {}]   ;;  %s268_s3 = inlined_call_operand.hbm [shape: f32[16,32], index: 3, kind: output, shape index: {}]  }
   0x1   :  { %v31_v0 = vld [vmem:[%s266_s1] sm:$0xff]  ;;  %v32_v1 = vld [vmem:[%s266_s1 + $0x8] sm:$0xff]  ;;  %v33_v2 = vld [vmem:[%s266_s1 + $0x10] sm:$0xff] }
   0x2   :  { %v166_v3 = vpack.c.bf16 %v32_v1, %v31_v0  ;;  %v34_v4 = vld [vmem:[%s266_s1 + $0x18] sm:$0xff]  ;;  %v29_v5 = vld [vmem:[%s265_s0] sm:$0xff] }
   0x3   :  { %v170_v6 = vpack.c.bf16 %v34_v4, %v33_v2  ;;  %163 = vmatprep.mubr.msk.f32.mxu0 %vm26_vm0, %v29_v5  ;;  %v146_v7 = vld [vmem:[%s267_s2] ss:$0 sm:$0xff] }
   0x4   :  { %8 = vsyncpa [#allocation4], 0  ;;  %167 = vmatprep.subr.bf16.mxu0 %v166_v3  ;;  %28 = vst.msk [vmem:[#allocation2 + $0x8] sm:$0xff] %vm26_vm0, %v146_v7  ;;  %v30_v8 = vld [vmem:[%s265_s0 + $0x8] sm:$0xff]  ;;  %s201_s2 = smov [#allocation3]  }
   0x5   :  { %27 = vst.msk [vmem:[#allocation2] sm:$0xff] %vm26_vm0, %v146_v7  ;;  %169 = vmatpush3.bf16.msra.mxu0 %v166_v3  ;;  %s135_s25 = sshll.u32 %s201_s2, 4  ;;  %s136_s25 = int_to_ptr.vmem [resolvable:$true] %s135_s25 }
   0x6   :  { %171 = vmatprep.subr.bf16.mxu0 %v170_v6  ;;  %s177_s0 = scalar_lea.vmem %s136_s25, 256  ;;  %p182_p1 = scmp.lt.s32.totalorder %s136_s25, %s136_s25 }
   0x7   :  { %p178_p0 = scmp.ne.s32.totalorder %s136_s25, %s177_s0  ;;  %p183_p2 = scmp.lt.s32.totalorder %s177_s0, %s177_s0 }
   0x9   :  { %173 = vmatpush3.bf16.msra.mxu0 %v170_v6  ;;  %p184_p3 = por %p183_p2, %p182_p1 }
   0xb   :  { %v36_v9 = vld [vmem:[#allocation2 + $0x8] sm:$0xff]  ;;  %p185_p4 = pnand %p184_p3, %p178_p0 }
   0xc   :  { %164 = vmatmul.mubr.msk.f32.vlgmr.msra.gmra.mrb[0].mxu0 %vm26_vm0, %v30_v8  ;;  %v35_v10 = vld [vmem:[#allocation2] sm:$0xff] }
  0xdf   :  { %v165_v11 = vpop.f32.mrb[0].mxu0 }
  0xe0   :  { %v120_v12 = vadd.f32 %v165_v11, %v36_v9  ;;  %v110_v13 = vpop.f32.mrb[1].mxu0 }
  0xe1   :  { %v119_v14 = vadd.f32 %v110_v13, %v35_v10 }
  0xe2   :  { %122 = vst.msk [vmem:[#allocation2 + $0x8] sm:$0xff] %vm26_vm0, %v120_v12 }
  0xe3   :  { %121 = vst.msk [vmem:[#allocation2] sm:$0xff] %vm26_vm0, %v119_v14 }
  0xe9   :  { %v127_v15 = vld [vmem:[#allocation2 + $0x8] sm:$0xff] }
  0xea   :  { %v126_v16 = vld [vmem:[#allocation2] sm:$0xff]  ;;  %129 = vst.msk [vmem:[#allocation3 + $0x8] sm:$0xff] %vm26_vm0, %v127_v15 }
  0xeb   :  { %128 = vst.msk [vmem:[#allocation3] sm:$0xff] %vm26_vm0, %v126_v16 }
  0xec   :  { %188 = shalt.err (!%p185_p4)
}
  0xed   :  { %s189_s28 = scalar_lea.hbm %s268_s3, 256 }
  0xee   :  { %p190_p5 = scmp.ne.s32.totalorder %s268_s3, %s189_s28  ;;  %p193_p6 = scmp.lt.u32.totalorder %s189_s28, %s268_s3 }
  0xf0   :  { %p195_p7 = pnand %p193_p6, %p190_p5 }
  0xf2   :  { %198 = shalt.err (!%p195_p7)
}
  0xf3   :  { %s202_s6 = smov 128   ;;  %s203_s7 = smov 8  }
  0xf4   :  { %141 = dma.vmem_to_hbm [thread:$0]  %s136_s25, 256, %s268_s3, [#allocation4], %s202_s6, %s202_s6, %s203_s7  }
  0xf5   :  { %199 = dma.done.wait [#allocation4], 256  }
  0xf6   :  { %200 = vsyncadd [#allocation4], 4294967040 }
  0xf7   :  { %145 = vsyncpa [#allocation4], 1 }

</bundles_post_ra>
